<compile_context>
chip_gen: v5e
topology: v5e:2x2
jax: 0.10.0
libtpu: 0.0.40
codegen_flags: <defaults>
</compile_context>

<pallas_src>
import jax
import jax.numpy as jnp
from jax import lax
from jax.experimental import pallas as pl
from jax.experimental.pallas import tpu as pltpu

# Hyperparameters from BoundaryFocalLoss.__init__ defaults.
ALPHA = 0.25
GAMMA = 2.0
BOUNDARY_WEIGHT = 2.0
LABEL_SMOOTHING = 0.05

_BLOCK_BYTE_TARGET = 2 * 1024 * 1024     # per-input, per-block f32 bytes
_VMEM_LIMIT_BYTES = 32 * 1024 * 1024     # safe on v5e/v6e (128 MiB) and v7x (64 MiB)


def _elementwise_focal_loss(x_raw, t_raw):
    """Per-element boundary-weighted focal loss for one (b_tile, T) block.

    T is never tiled, so the in-block roll along lanes is the true global
    shift and column 0 is the true sequence start (no halo needed).
    """
    x = x_raw.astype(jnp.float32)
    t = t_raw.astype(jnp.float32)

    is_pos = t > 0.5
    smoothed = jnp.where(is_pos,
                         jnp.float32(1.0 - LABEL_SMOOTHING / 2.0),
                         jnp.float32(LABEL_SMOOTHING / 2.0))

    # Boundaries: |t[b, i] - t[b, i-1]| with boundaries[b, 0] = 0.
    prev = pltpu.roll(t, shift=1, axis=1)
    col = lax.broadcasted_iota(jnp.int32, t.shape, 1)
    boundaries = jnp.where(col == 0, jnp.float32(0.0), jnp.abs(t - prev))
    weights = 1.0 + boundaries * jnp.float32(BOUNDARY_WEIGHT - 1.0)

    # Numerically stable BCE-with-logits (matches F.binary_cross_entropy_with_logits).
    bce = jnp.maximum(x, 0.0) - x * smoothed + jnp.log1p(jnp.exp(-jnp.abs(x)))

    pt = jnp.exp(-bce)
    one_minus_pt = 1.0 - pt
    if float(GAMMA) == 2.0:
        focal = one_minus_pt * one_minus_pt          # VALU square, avoids EUP pow
    else:
        focal = one_minus_pt ** jnp.float32(GAMMA)   # generic fallback

    alpha_w = jnp.where(is_pos, jnp.float32(ALPHA), jnp.float32(1.0 - ALPHA))
    return alpha_w * focal * bce * weights


def _masked_kernel(x_ref, t_ref, m_ref, loss_sum_ref, mask_sum_ref, acc_ref):
    i = pl.program_id(0)

    @pl.when(i == 0)
    def _():
        acc_ref[0] = jnp.float32(0.0)
        acc_ref[1] = jnp.float32(0.0)

    m = m_ref[...].astype(jnp.float32)
    f_loss = _elementwise_focal_loss(x_ref[...], t_ref[...])
    acc_ref[0] += jnp.sum(f_loss * m)
    acc_ref[1] += jnp.sum(m)

    @pl.when(i == pl.num_programs(0) - 1)
    def _():
        loss_sum_ref[0, 0] = acc_ref[0]
        mask_sum_ref[0, 0] = acc_ref[1]


def _nomask_kernel(x_ref, t_ref, loss_sum_ref, acc_ref):
    i = pl.program_id(0)

    @pl.when(i == 0)
    def _():
        acc_ref[0] = jnp.float32(0.0)

    f_loss = _elementwise_focal_loss(x_ref[...], t_ref[...])
    acc_ref[0] += jnp.sum(f_loss)

    @pl.when(i == pl.num_programs(0) - 1)
    def _():
        loss_sum_ref[0, 0] = acc_ref[0]


def _pick_b_tile(B, T):
    """Largest batch tile that divides B, is a multiple of 8, and keeps a
    (b_tile, T) f32 block under the per-block byte budget."""
    for d in (1024, 512, 256, 128, 64, 32, 16, 8):
        if B % d == 0 and d * T * 4 <= _BLOCK_BYTE_TARGET:
            return d
    if B % 8 == 0:
        return 8
    # B not a multiple of 8: single full-array block (grid of size 1).
    # TODO(synk): for very large T with small/odd B, add T-tiling with a
    # 1-column halo for `targets` (and a global column index) instead.
    return B


def boundary_focal_loss(inputs, targets, mask=None):
    """JAX/Pallas equivalent of BoundaryFocalLoss.forward (default hparams)."""
    if targets.ndim == 1:
        inputs = inputs[None, :]
        targets = targets[None, :]
        if mask is not None:
            mask = mask[None, :]

    B, T = targets.shape
    b_tile = _pick_b_tile(B, T)
    grid = (B // b_tile,)

    def bspec():
        return pl.BlockSpec((b_tile, T), lambda i: (i, 0))

    compiler_params = pltpu.CompilerParams(
        dimension_semantics=("arbitrary",),
        vmem_limit_bytes=_VMEM_LIMIT_BYTES,
    )

    if mask is None:
        # No synthetic all-ones mask is streamed; mean divisor is just B*T.
        loss_sum = pl.pallas_call(
            _nomask_kernel,
            out_shape=jax.ShapeDtypeStruct((1, 1), jnp.float32),
            grid_spec=pltpu.PrefetchScalarGridSpec(
                num_scalar_prefetch=0,
                grid=grid,
                in_specs=[bspec(), bspec()],
                out_specs=pl.BlockSpec(memory_space=pltpu.SMEM),
                scratch_shapes=[pltpu.SMEM((1,), jnp.float32)],
            ),
            compiler_params=compiler_params,
        )(inputs, targets)
        return loss_sum[0, 0] / jnp.float32(B * T)

    loss_sum, mask_sum = pl.pallas_call(
        _masked_kernel,
        out_shape=(
            jax.ShapeDtypeStruct((1, 1), jnp.float32),
            jax.ShapeDtypeStruct((1, 1), jnp.float32),
        ),
        grid_spec=pltpu.PrefetchScalarGridSpec(
            num_scalar_prefetch=0,
            grid=grid,
            in_specs=[bspec(), bspec(), bspec()],
            out_specs=(
                pl.BlockSpec(memory_space=pltpu.SMEM),
                pl.BlockSpec(memory_space=pltpu.SMEM),
            ),
            scratch_shapes=[pltpu.SMEM((2,), jnp.float32)],
        ),
        compiler_params=compiler_params,
    )(inputs, targets, mask)

    ls = loss_sum[0, 0]
    ms = mask_sum[0, 0]
    # sum / mask.sum() if mask.sum() > 0 else 0.0
    return jnp.where(ms > 0, ls / jnp.maximum(ms, jnp.float32(1e-30)),
                     jnp.float32(0.0))


def _reference(inputs, targets, mask=None):
    """Pure-JAX reference mirroring the PyTorch forward, for verification."""
    if targets.ndim == 1:
        inputs, targets = inputs[None, :], targets[None, :]
        if mask is not None:
            mask = mask[None, :]
    t = targets.astype(jnp.float32)
    x = inputs.astype(jnp.float32)
    smoothed = jnp.where(t > 0.5, 1.0 - LABEL_SMOOTHING / 2.0, LABEL_SMOOTHING / 2.0)
    trans = jnp.abs(t[:, 1:] - t[:, :-1])
    boundaries = jnp.concatenate([jnp.zeros((t.shape[0], 1), jnp.float32), trans], axis=1)
    weights = 1.0 + boundaries * (BOUNDARY_WEIGHT - 1.0)
    bce = jnp.maximum(x, 0.0) - x * smoothed + jnp.log1p(jnp.exp(-jnp.abs(x)))
    pt = jnp.exp(-bce)
    aw = jnp.where(t > 0.5, ALPHA, 1.0 - ALPHA)
    fl = aw * (1.0 - pt) ** GAMMA * bce * weights
    if mask is not None:
        m = mask.astype(jnp.float32)
        return jnp.where(m.sum() > 0, (fl * m).sum() / jnp.maximum(m.sum(), 1e-30), 0.0)
    return fl.mean()


if __name__ == "__main__":
    key = jax.random.PRNGKey(0)

    # Small shapes (single-block path).
    k1, k2, k3 = jax.random.split(key, 3)
    B, T = 2, 16
    logits = jax.random.normal(k1, (B, T), dtype=jnp.float32)
    targets = jax.random.bernoulli(k2, p=0.4, shape=(B, T)).astype(jnp.float32)
    mask = jax.random.bernoulli(k3, p=0.8, shape=(B, T)).astype(jnp.float32)

    loss = jax.block_until_ready(boundary_focal_loss(logits, targets))
    ref = _reference(logits, targets)
    assert jnp.allclose(loss, ref, rtol=1e-5, atol=1e-6), (loss, ref)

    loss_m = jax.block_until_ready(boundary_focal_loss(logits, targets, mask))
    ref_m = _reference(logits, targets, mask)
    assert jnp.allclose(loss_m, ref_m, rtol=1e-5, atol=1e-6), (loss_m, ref_m)

    # Larger shapes that exercise the tiled grid (B=48 -> b_tile=16, 3 steps).
    k4, k5, k6 = jax.random.split(jax.random.PRNGKey(1), 3)
    B2, T2 = 48, 256
    logits2 = jax.random.normal(k4, (B2, T2), dtype=jnp.float32)
    targets2 = jax.random.bernoulli(k5, p=0.4, shape=(B2, T2)).astype(jnp.float32)
    mask2 = jax.random.bernoulli(k6, p=0.8, shape=(B2, T2)).astype(jnp.float32)

    loss2 = jax.block_until_ready(boundary_focal_loss(logits2, targets2))
    ref2 = _reference(logits2, targets2)
    assert jnp.allclose(loss2, ref2, rtol=1e-5, atol=1e-5), (loss2, ref2)

    loss2_m = jax.block_until_ready(boundary_focal_loss(logits2, targets2, mask2))
    ref2_m = _reference(logits2, targets2, mask2)
    assert jnp.allclose(loss2_m, ref2_m, rtol=1e-5, atol=1e-5), (loss2_m, ref2_m)

    print("KERNEL_OK")
</pallas_src>

<mosaic_0001>
module attributes {stable_mosaic.version = 11 : i64} {
  func.func @_nomask_kernel(%arg0: i32, %arg1: memref<2x16xf32, #tpu.memory_space<vmem>>, %arg2: memref<2x16xf32, #tpu.memory_space<vmem>>, %arg3: memref<1x1xf32, #tpu.memory_space<smem>>, %arg4: memref<1xf32, #tpu.memory_space<smem>>) attributes {dimension_semantics = [#tpu.dimension_semantics<arbitrary>], iteration_bounds = array<i64: 1>, scalar_prefetch = 0 : i64, scratch_operands = 1 : i64, tpu.core_type = #tpu.core_type<tc>, window_params = [{transform_indices = @transform_0, window_bounds = array<i64: 2, 16>}, {transform_indices = @transform_1, window_bounds = array<i64: 2, 16>}, {transform_indices = @transform_2, window_bounds = array<i64: 1, 1>}]} {
    %c0_i32 = arith.constant 0 : i32
    %0 = arith.cmpi eq, %arg0, %c0_i32 : i32
    %1 = arith.extui %0 : i1 to i32
    %c0_i32_0 = arith.constant 0 : i32
    %2 = arith.cmpi ne, %1, %c0_i32_0 : i32
    scf.if %2 {
      %cst_21 = arith.constant 0.000000e+00 : f32
      %c0_22 = arith.constant 0 : index
      %54 = memref.load %arg4[%c0_22] : memref<1xf32, #tpu.memory_space<smem>>
      memref.store %cst_21, %arg4[%c0_22] : memref<1xf32, #tpu.memory_space<smem>>
    } else {
    }
    %c0 = arith.constant 0 : index
    %c0_1 = arith.constant 0 : index
    %3 = vector.load %arg1[%c0, %c0_1] : memref<2x16xf32, #tpu.memory_space<vmem>>, vector<2x16xf32>
    %c0_2 = arith.constant 0 : index
    %c0_3 = arith.constant 0 : index
    %4 = vector.load %arg2[%c0_2, %c0_3] : memref<2x16xf32, #tpu.memory_space<vmem>>, vector<2x16xf32>
    %cst = arith.constant 5.000000e-01 : f32
    %5 = vector.broadcast %cst : f32 to vector<2x16xf32>
    %6 = arith.cmpf ogt, %4, %5 : vector<2x16xf32>
    %cst_4 = arith.constant 9.750000e-01 : f32
    %cst_5 = arith.constant 2.500000e-02 : f32
    %7 = vector.broadcast %cst_4 : f32 to vector<2x16xf32>
    %8 = vector.broadcast %cst_5 : f32 to vector<2x16xf32>
    %9 = arith.select %6, %7, %8 : vector<2x16xi1>, vector<2x16xf32>
    %c1_i32 = arith.constant 1 : i32
    %10 = tpu.dynamic_rotate %4 by %c1_i32 dim 1 : vector<2x16xf32>, i32 -> vector<2x16xf32>
    %11 = tpu.iota {dimensions = array<i32: 1>} : vector<2x16xi32>
    %c0_i32_6 = arith.constant 0 : i32
    %12 = vector.broadcast %c0_i32_6 : i32 to vector<2x16xi32>
    %13 = arith.cmpi eq, %11, %12 : vector<2x16xi32>
    %14 = arith.subf %4, %10 : vector<2x16xf32>
    %15 = math.absf %14 : vector<2x16xf32>
    %cst_7 = arith.constant 0.000000e+00 : f32
    %16 = vector.broadcast %cst_7 : f32 to vector<2x16xf32>
    %17 = arith.select %13, %16, %15 : vector<2x16xi1>, vector<2x16xf32>
    %cst_8 = arith.constant 1.000000e+00 : f32
    %18 = vector.broadcast %cst_8 : f32 to vector<2x16xf32>
    %19 = arith.mulf %17, %18 : vector<2x16xf32>
    %cst_9 = arith.constant 1.000000e+00 : f32
    %20 = vector.broadcast %cst_9 : f32 to vector<2x16xf32>
    %21 = arith.addf %20, %19 : vector<2x16xf32>
    %cst_10 = arith.constant 0.000000e+00 : f32
    %22 = vector.broadcast %cst_10 : f32 to vector<2x16xf32>
    %23 = arith.maximumf %3, %22 : vector<2x16xf32>
    %24 = arith.mulf %3, %9 : vector<2x16xf32>
    %25 = arith.subf %23, %24 : vector<2x16xf32>
    %26 = math.absf %3 : vector<2x16xf32>
    %cst_11 = arith.constant 0.000000e+00 : f32
    %27 = vector.broadcast %cst_11 : f32 to vector<2x16xf32>
    %28 = arith.subf %27, %26 : vector<2x16xf32>
    %29 = math.exp %28 : vector<2x16xf32>
    %30 = math.log1p %29 : vector<2x16xf32>
    %31 = arith.addf %25, %30 : vector<2x16xf32>
    %cst_12 = arith.constant 0.000000e+00 : f32
    %32 = vector.broadcast %cst_12 : f32 to vector<2x16xf32>
    %33 = arith.subf %32, %31 : vector<2x16xf32>
    %34 = math.exp %33 : vector<2x16xf32>
    %cst_13 = arith.constant 1.000000e+00 : f32
    %35 = vector.broadcast %cst_13 : f32 to vector<2x16xf32>
    %36 = arith.subf %35, %34 : vector<2x16xf32>
    %37 = arith.mulf %36, %36 : vector<2x16xf32>
    %cst_14 = arith.constant 2.500000e-01 : f32
    %cst_15 = arith.constant 7.500000e-01 : f32
    %38 = vector.broadcast %cst_14 : f32 to vector<2x16xf32>
    %39 = vector.broadcast %cst_15 : f32 to vector<2x16xf32>
    %40 = arith.select %6, %38, %39 : vector<2x16xi1>, vector<2x16xf32>
    %41 = arith.mulf %40, %37 : vector<2x16xf32>
    %42 = arith.mulf %41, %31 : vector<2x16xf32>
    %43 = arith.mulf %42, %21 : vector<2x16xf32>
    %c0_16 = arith.constant 0 : index
    %44 = memref.load %arg4[%c0_16] : memref<1xf32, #tpu.memory_space<smem>>
    %45 = vector.shape_cast %43 : vector<2x16xf32> to vector<1x2x16xf32>
    %cst_17 = arith.constant dense<0.000000e+00> : vector<1xf32>
    %46 = vector.multi_reduction <add>, %45, %cst_17 [1, 2] : vector<1x2x16xf32> to vector<1xf32>
    %47 = vector.shape_cast %46 : vector<1xf32> to vector<1x1x1xf32>
    %48 = vector.extract %47[0, 0, 0] : f32 from vector<1x1x1xf32>
    %49 = arith.addf %44, %48 : f32
    %c0_18 = arith.constant 0 : index
    %50 = memref.load %arg4[%c0_18] : memref<1xf32, #tpu.memory_space<smem>>
    memref.store %49, %arg4[%c0_18] : memref<1xf32, #tpu.memory_space<smem>>
    %c0_i32_19 = arith.constant 0 : i32
    %51 = arith.cmpi eq, %arg0, %c0_i32_19 : i32
    %52 = arith.extui %51 : i1 to i32
    %c0_i32_20 = arith.constant 0 : i32
    %53 = arith.cmpi ne, %52, %c0_i32_20 : i32
    scf.if %53 {
      %c0_21 = arith.constant 0 : index
      %54 = memref.load %arg4[%c0_21] : memref<1xf32, #tpu.memory_space<smem>>
      %c0_22 = arith.constant 0 : index
      %c0_23 = arith.constant 0 : index
      %55 = memref.load %arg3[%c0_22, %c0_23] : memref<1x1xf32, #tpu.memory_space<smem>>
      memref.store %54, %arg3[%c0_22, %c0_23] : memref<1x1xf32, #tpu.memory_space<smem>>
    } else {
    }
    return
  }
  func.func @transform_0(%arg0: i32) -> (i32, i32) {
    %c0_i32 = arith.constant 0 : i32
    %c0_i32_0 = arith.constant 0 : i32
    return %arg0, %c0_i32 : i32, i32
  }
  func.func @transform_1(%arg0: i32) -> (i32, i32) {
    %c0_i32 = arith.constant 0 : i32
    %c0_i32_0 = arith.constant 0 : i32
    return %arg0, %c0_i32 : i32, i32
  }
  func.func @transform_2(%arg0: i32) -> (i32, i32) {
    %c0_i32 = arith.constant 0 : i32
    %c0_i32_0 = arith.constant 0 : i32
    %c0_i32_1 = arith.constant 0 : i32
    return %c0_i32, %c0_i32_0 : i32, i32
  }
}

</mosaic_0001>

<bundles_post_ra>
// kernel: tpu_custom_call.1
= control target key start
LH: loop header
LB: loop body
LE: loop exit
PB: predicated region body
PF: predicated region fallthrough
CT: control target
= control target key end

     0   :  { %7 = vsyncpa [#allocation4], 0  ;;  %s246_s0 = inlined_call_operand.hbm [shape: f32[2,16], index: 0, kind: input, shape index: {}]   ;;  %s247_s1 = inlined_call_operand.hbm [shape: f32[2,16], index: 1, kind: input, shape index: {}]   ;;  %s248_s2 = inlined_call_operand.hbm [shape: f32[1,1], index: 2, kind: output, shape index: {}]  }
   0x1   :  { %8 = vsyncpa [#allocation7], 0 }
   0x2   :  { %9 = vsyncpa [#allocation5], 0  ;;  %s15_s11 = sshll.u32 %s246_s0, 4  ;;  %s213_s12 = smov [#allocation3]   ;;  %s16_s11 = int_to_ptr.hbm [resolvable:$true] %s15_s11 }
   0x3   :  { %s17_s13 = sshll.u32 %s213_s12, 4  ;;  %s26_s16 = sshll.u32 %s247_s1, 4  ;;  %s18_s13 = int_to_ptr.vmem [resolvable:$true] %s17_s13  ;;  %s27_s16 = int_to_ptr.hbm [resolvable:$true] %s26_s16 }
   0x4   :  { %20 = dma.hbm_to_vmem [thread:$0]  %s16_s11, 32, %s18_s13, [#allocation4]  }
   0x5   :  { %s214_s17 = smov [#allocation6]  }
   0x6   :  { %s28_s18 = sshll.u32 %s214_s17, 4  ;;  %s29_s18 = int_to_ptr.vmem [resolvable:$true] %s28_s18 }
   0x7   :  { %31 = dma.hbm_to_vmem [thread:$0]  %s27_s16, 32, %s29_s18, [#allocation7]  }
   0x8   :  { %207 = dma.done.wait [#allocation4], 32  }
   0x9   :  { %208 = vsyncadd [#allocation4], 4294967264 }
   0xa   :  { %209 = dma.done.wait [#allocation7], 32  }
   0xb   :  { %210 = vsyncadd [#allocation7], 4294967264  ;;  %v47_v0 = vld [vmem:[#allocation6] sm:$0x3]  ;;  %s215_s0 = smov 16   ;;  %vm50_vm0 = vcmask 1047680   ;;  %v57_v28 = vlaneseq }
   0xc   :  { %51 = vrot.lane.b32.xlu0 %v47_v0, %s215_s0  ;;  %s216_s1 = smov 113   ;;  %v46_v5 = vld [vmem:[#allocation3] sm:$0x3]  ;;  %vm48_vm1 = vcmp.gt.f32.partialorder %v47_v0, 0.5  ;;  %v217_v12 = vmov 0.025  }
   0xd   :  { %v71_v6 = vand.u32 2147483647, %v46_v5  ;;  %v49_v13 = vsel %vm48_vm1, 0.975, %v217_v12  ;;  %v68_v17 = vmax.f32 %v46_v5, 0.0  ;;  %v218_v30 = vmov 0.75  }
   0xe   :  { %v69_v18 = vmul.f32 %v49_v13, %v46_v5  ;;  %v90_v31 = vsel %vm48_vm1, 0.25, %v218_v30  ;;  %v58_v32 = vand.u32 127, %v57_v28  ;;  %vm95_vm4 = vcmask 123904   ;;  %s120_s21 = sshll.u32 %s248_s2, 4  ;;  %s219_s23 = smov [#allocation8]   ;;  %s121_s21 = int_to_ptr.hbm [resolvable:$true] %s120_s21 }
   0xf   :  { %v72_v7 = vsub.f32 0.0, %v71_v6 }
  0x10   :  { %v70_v21 = vsub.f32 %v68_v17, %v69_v18  ;;  %vm59_vm3 = vcmp.eq.s32.totalorder %v58_v32, 0 }
  0x11   :  { %v73_v8 = vmul.f32 1.442695, %v72_v7 }
  0x13   :  { %141 = vpow2.f32 %v73_v8 }
  0x19   :  { %v142_v9 = vpop.eup %141 }
  0x1a   :  { %v75_v10 = vadd.f32 1.0, %v142_v9  ;;  %v78_v11 = vmul.f32 -0.5, %v142_v9  ;;  %v81_v16 = vand.u32 2147483647, %v142_v9 }
  0x1c   :  { %143 = vlog2.f32 %v75_v10  ;;  %v79_v14 = vadd.f32 1.0, %v78_v11  ;;  %vm82_vm2 = vcmp.lt.f32.partialorder %v81_v16, 0.0004427343 }
  0x1e   :  { %v80_v20 = vmul.f32 %v142_v9, %v79_v14 }
  0x22   :  { %v144_v15 = vpop.eup %143 }
  0x23   :  { %v77_v19 = vmul.f32 0.6931472, %v144_v15 }
  0x25   :  { %v83_v22 = vsel %vm82_vm2, %v80_v20, %v77_v19 }
  0x26   :  { %v84_v23 = vadd.f32 %v83_v22, %v70_v21 }
  0x28   :  { %v85_v24 = vsub.f32 0.0, %v84_v23 }
  0x2a   :  { %v86_v25 = vmul.f32 1.442695, %v85_v24 }
  0x2c   :  { %145 = vpow2.f32 %v86_v25 }
  0x32   :  { %v146_v26 = vpop.eup %145 }
  0x33   :  { %v88_v27 = vsub.f32 1.0, %v146_v26 }
  0x35   :  { %v89_v29 = vmul.f32 %v88_v27, %v88_v27 }
  0x37   :  { %v91_v34 = vmul.f32 %v90_v31, %v89_v29 }
  0x39   :  { %v92_v37 = vmul.f32 %v91_v34, %v84_v23 }
  0x7e   :  { %v52_v1 = vpop.permute.xlu0 %51 }
  0x7f   :  { %v53_v2 = vsel %vm50_vm0, %v52_v1, %v47_v0 }
  0x80   :  { %54 = vrot.lane.b32.xlu0 %v53_v2, %s215_s0 }
  0xf2   :  { %v55_v3 = vpop.permute.xlu0 %54 }
  0xf3   :  { %v56_v4 = vsel %vm50_vm0, %v55_v3, %v47_v0 }
  0xf4   :  { %61 = vrot.lane.b32.xlu1 %v56_v4, %s216_s1 }
 0x166   :  { %v62_v33 = vpop.permute.xlu1 %61 }
 0x167   :  { %v64_v35 = vsub.f32 %v47_v0, %v62_v33 }
 0x169   :  { %v65_v36 = vand.u32 2147483647, %v64_v35 }
 0x16b   :  { %v66_v38 = vsel %vm59_vm3, 0.0, %v65_v36 }
 0x16c   :  { %v67_v39 = vadd.f32 1.0, %v66_v38 }
 0x16e   :  { %v93_v40 = vmul.f32 %v92_v37, %v67_v39 }
 0x170   :  { %v96_v41 = vsel %vm95_vm4, %v93_v40, 0.0 }
 0x171   :  { %97 = vadd.xlane.f32.xlu1 %v96_v41 }
 0x1e4   :  { %v98_v42 = vpop.xlane.xlu1 %97 }
 0x1e5   :  { %v99_v43 = vrot.slane %v98_v42, 4 }
 0x1e7   :  { %v100_v44 = vadd.f32 %v99_v43, %v98_v42 }
 0x1e9   :  { %v101_v45 = vrot.slane %v100_v44, 2 }
 0x1eb   :  { %v102_v46 = vadd.f32 %v101_v45, %v100_v44 }
 0x1ed   :  { %v103_v47 = vrot.slane %v102_v46, 1 }
 0x1ef   :  { %v104_v48 = vadd.f32 %v103_v47, %v102_v46 }
 0x1f1   :  { %132 = vpush %v104_v48 }
 0x222   :  { %s133_s22 = spop %132 }
 0x223   :  { %114 = sst [smem:[#allocation8]] %s133_s22 }
 0x224   :  { %123 = dma.smem_to_hbm %s219_s23, 16, %s121_s21, [#allocation5]  }
 0x225   :  { %211 = dma.done.wait [#allocation5], 16  }
 0x226   :  { %212 = vsyncadd [#allocation5], 4294967280 }
 0x227   :  { %128 = sfence }
 0x228   :  { %129 = vsyncpa [#allocation4], 1 }
 0x229   :  { %130 = vsyncpa [#allocation7], 1 }
 0x22a   :  { %131 = vsyncpa [#allocation5], 1 }

</bundles_post_ra>
